<compile_context>
chip_gen: v5e
topology: v5e:2x2
jax: 0.10.0
libtpu: 0.0.40
codegen_flags: <defaults>
</compile_context>

<pallas_src>
import functools

import jax
import jax.numpy as jnp
from jax.experimental import pallas as pl
from jax.experimental.pallas import tpu as pltpu

_LANE = 128
_HEADROOM_BYTES = 6 << 20  # compiler internal scratch / misc slack


# --------------------------------------------------------------------------
# Kernels
# --------------------------------------------------------------------------
def _mlp_resident_kernel(x_ref, w1_ref, b1_ref, w2_ref, b2_ref, o_ref, *,
                         cast_bf16):
    """Fused Linear -> ReLU -> Linear on one (TB, d_*) batch tile.

    Weights/biases live whole in VMEM (single copy, DMA'd once); only the
    x / o tiles stream per grid step.  MXU accumulates in f32."""
    x = x_ref[...]
    w1 = w1_ref[...]
    w2 = w2_ref[...]
    if cast_bf16:
        x = x.astype(jnp.bfloat16)
        w1 = w1.astype(jnp.bfloat16)
        w2 = w2.astype(jnp.bfloat16)
    h = jnp.dot(x, w1, preferred_element_type=jnp.float32)
    h = jnp.maximum(h + b1_ref[...].astype(jnp.float32), 0.0)   # bias + ReLU
    y = jnp.dot(h.astype(w2.dtype), w2, preferred_element_type=jnp.float32)
    o_ref[...] = (y + b2_ref[...].astype(jnp.float32)).astype(o_ref.dtype)


def _mlp_hidden_tiled_kernel(x_ref, w1_ref, b1_ref, w2_ref, b2_ref, o_ref,
                             acc_ref, *, cast_bf16):
    """Streamed-weight variant: hidden dim tiled as a reduction grid axis.

    Per step: h_k = relu(x @ W1[:, k] + b1[k]); acc += h_k @ W2[k, :].
    The f32 accumulator stays resident across the (last, "arbitrary") axis."""
    k = pl.program_id(1)

    @pl.when(k == 0)
    def _init():
        acc_ref[...] = jnp.zeros_like(acc_ref)

    x = x_ref[...]
    w1 = w1_ref[...]
    w2 = w2_ref[...]
    if cast_bf16:
        x = x.astype(jnp.bfloat16)
        w1 = w1.astype(jnp.bfloat16)
        w2 = w2.astype(jnp.bfloat16)
    h = jnp.dot(x, w1, preferred_element_type=jnp.float32)
    h = jnp.maximum(h + b1_ref[...].astype(jnp.float32), 0.0)
    acc_ref[...] += jnp.dot(h.astype(w2.dtype), w2,
                            preferred_element_type=jnp.float32)

    @pl.when(k == pl.num_programs(1) - 1)
    def _finish():
        o_ref[...] = (acc_ref[...]
                      + b2_ref[...].astype(jnp.float32)).astype(o_ref.dtype)


# --------------------------------------------------------------------------
# Helpers
# --------------------------------------------------------------------------
def _round_up(x: int, m: int) -> int:
    return (x + m - 1) // m * m


def _vmem_budget_bytes() -> int:
    """Generation-aware VMEM budget (~87% of per-core capacity)."""
    try:
        cap = int(pltpu.get_tpu_info().vmem_capacity_bytes)
    except Exception:
        cap = 64 << 20  # conservative: v7x per-TensorCore VMEM
    return int(cap * 0.875)


def _pad2(a, rows: int, cols: int):
    """Zero-pad a 2-D array up to (rows, cols); no-op (no copy) if aligned."""
    pr = rows - a.shape[0]
    pc = cols - a.shape[1]
    if pr == 0 and pc == 0:
        return a
    return jnp.pad(a, ((0, pr), (0, pc)))


def _pick_batch_tile(batch: int, sub: int, block_batch: int):
    """Batch tile = multiple of the sublane pack; prefer an exact divisor of
    the batch (skips activation padding entirely)."""
    cap = max(sub, (block_batch // sub) * sub)
    cap = min(cap, _round_up(batch, sub))
    if batch % sub == 0:
        t = cap
        while t >= sub:
            if batch % t == 0:
                return t, batch            # no padding needed
            t -= sub
    tb = cap
    return tb, _round_up(batch, tb)


# --------------------------------------------------------------------------
# Forward
# --------------------------------------------------------------------------
def model_shard_forward(x, w1, b1, w2, b2, *, block_batch: int = 512,
                        hidden_block: int | None = None,
                        use_bf16_operands: bool = False,
                        out_features: int | None = None):
    """ModelShard forward (the wrapped MLP shard) as a Pallas TPU kernel.

    x:  (B, d_in); w1: (d_in, d_hid); b1: (d_hid,) or (1, d_hid);
    w2: (d_hid, d_out); b2: (d_out,) or (1, d_out).
    Weights are stored (in, out), i.e. transposed vs. torch.nn.Linear.
    `hidden_block` forces the streamed-weight (hidden-tiled) path.
    `use_bf16_operands` is an opt-in MXU fast path (f32 accumulation kept)."""
    batch, d_in = x.shape
    d_hid = w1.shape[1]
    d_out = w2.shape[1]
    if out_features is None:
        out_features = d_out
    dtype = x.dtype
    itemsize = jnp.dtype(dtype).itemsize
    needs_cast_copy = use_bf16_operands or jnp.dtype(dtype) != jnp.float32

    b1 = jnp.reshape(b1, (1, d_hid))
    b2 = jnp.reshape(b2, (1, d_out))

    # ---- lane-dense padding of the feature axes (128-multiples) -----------
    d_in_p = _round_up(d_in, _LANE)
    d_hid_p = _round_up(d_hid, _LANE)
    d_out_p = _round_up(d_out, _LANE)

    # No-ops when ModelShardPallas pre-padded the weights at construction.
    w1_p = _pad2(w1, d_in_p, d_hid_p)
    b1_p = _pad2(b1, 1, d_hid_p)
    w2_p = _pad2(w2, d_hid_p, d_out_p)
    b2_p = _pad2(b2, 1, d_out_p)

    # ---- batch tile: sublane multiple, prefer exact divisor of batch ------
    sub = 16 if jnp.dtype(dtype) == jnp.bfloat16 else 8
    tb, batch_p = _pick_batch_tile(batch, sub, block_batch)

    # ≥2 grid steps so both v7x TensorCores get work (cheap on 1-TC chips).
    if batch_p // tb < 2 and tb >= 2 * sub:
        half = (tb // 2 // sub) * sub
        if half >= sub and batch_p % half == 0:
            tb = half

    if batch_p == batch and d_in_p == d_in:
        x_p = x                                         # aligned: no HBM copy
    else:
        x_p = jnp.pad(x, ((0, batch_p - batch), (0, d_in_p - d_in)))

    budget = _vmem_budget_bytes()

    cost = pl.CostEstimate(
        flops=2 * batch_p * d_in_p * d_hid_p + 2 * batch_p * d_hid_p * d_out_p,
        transcendentals=0,
        bytes_accessed=(batch_p * d_in_p + d_in_p * d_hid_p + d_hid_p
                        + d_hid_p * d_out_p + d_out_p
                        + batch_p * d_out_p) * itemsize,
    )

    # ---- VMEM accounting (single-copy weights + intermediates) ------------
    resident_bytes = (
        (d_in_p * d_hid_p + d_hid_p * d_out_p + d_hid_p + d_out_p) * itemsize
        + 2 * tb * (d_in_p + d_out_p) * itemsize     # x / o double-buffered
        + tb * d_hid_p * 4                           # f32 hidden intermediate
        + (tb * d_hid_p * 2 if needs_cast_copy else 0)
        + _HEADROOM_BYTES)

    force_hidden = (hidden_block is not None
                    and _round_up(hidden_block, _LANE) < d_hid_p)
    use_resident = (not force_hidden) and resident_bytes <= budget

    vmem_space = pltpu.MemorySpace.VMEM

    if use_resident:
        vmem_limit = int(min(budget, max(resident_bytes, 32 << 20)))
        kernel = functools.partial(_mlp_resident_kernel,
                                   cast_bf16=use_bf16_operands)
        y_p = pl.pallas_call(
            kernel,
            out_shape=jax.ShapeDtypeStruct((batch_p, d_out_p), dtype),
            grid_spec=pl.GridSpec(
                grid=(batch_p // tb,),
                in_specs=[
                    pl.BlockSpec((tb, d_in_p), lambda i: (i, 0)),   # x streams
                    pl.BlockSpec(memory_space=vmem_space),          # W1 resident
                    pl.BlockSpec(memory_space=vmem_space),          # b1 resident
                    pl.BlockSpec(memory_space=vmem_space),          # W2 resident
                    pl.BlockSpec(memory_space=vmem_space),          # b2 resident
                ],
                out_specs=pl.BlockSpec((tb, d_out_p), lambda i: (i, 0)),
            ),
            compiler_params=pltpu.CompilerParams(
                dimension_semantics=("parallel",),
                vmem_limit_bytes=vmem_limit,
            ),
            cost_estimate=cost,
        )(x_p, w1_p, b1_p, w2_p, b2_p)
    else:
        # -------- streamed-weight path: tile the hidden (reduction) dim ----
        if hidden_block is not None:
            tk = min(d_hid_p, max(_LANE, _round_up(hidden_block, _LANE)))
        else:
            fixed = (2 * tb * (d_in_p + d_out_p) * itemsize
                     + tb * d_out_p * 4              # f32 accumulator scratch
                     + d_out_p * itemsize            # resident b2
                     + _HEADROOM_BYTES)
            per_tk = (2 * (d_in_p + d_out_p + 1) * itemsize
                      + tb * (4 + (2 if needs_cast_copy else 0)))
            tk = (budget - fixed) // per_tk if budget > fixed else _LANE
            tk = max(_LANE, min(d_hid_p, (tk // _LANE) * _LANE))
        while d_hid_p % tk != 0:                     # keep an exact tiling
            tk -= _LANE

        used = (2 * (d_in_p * tk + tk + tk * d_out_p) * itemsize
                + d_out_p * itemsize
                + 2 * tb * (d_in_p + d_out_p) * itemsize
                + tb * d_out_p * 4
                + tb * tk * 4
                + (tb * tk * 2 if needs_cast_copy else 0)
                + _HEADROOM_BYTES)
        vmem_limit = int(min(budget, max(used, 32 << 20)))

        kernel = functools.partial(_mlp_hidden_tiled_kernel,
                                   cast_bf16=use_bf16_operands)
        y_p = pl.pallas_call(
            kernel,
            out_shape=jax.ShapeDtypeStruct((batch_p, d_out_p), dtype),
            grid_spec=pl.GridSpec(
                grid=(batch_p // tb, d_hid_p // tk),   # reduction axis last
                in_specs=[
                    pl.BlockSpec((tb, d_in_p), lambda i, k: (i, 0)),
                    pl.BlockSpec((d_in_p, tk), lambda i, k: (0, k)),
                    pl.BlockSpec((1, tk), lambda i, k: (0, k)),
                    pl.BlockSpec((tk, d_out_p), lambda i, k: (k, 0)),
                    pl.BlockSpec(memory_space=vmem_space),           # b2
                ],
                out_specs=pl.BlockSpec((tb, d_out_p), lambda i, k: (i, 0)),
                scratch_shapes=[pltpu.VMEM((tb, d_out_p), jnp.float32)],
            ),
            compiler_params=pltpu.CompilerParams(
                dimension_semantics=("parallel", "arbitrary"),
                vmem_limit_bytes=vmem_limit,
            ),
            cost_estimate=cost,
        )(x_p, w1_p, b1_p, w2_p, b2_p)

    return y_p[:batch, :out_features]


# --------------------------------------------------------------------------
# Module wrapper
# --------------------------------------------------------------------------
class ModelShardPallas:
    """Mirror of fairscale's ModelShard: wraps one shard, runs it on forward.

    The CUDA-stream / offload bookkeeping of the original class has no compute
    semantics; the load/drop hooks are no-ops here.  Weights are padded to
    lane-dense shapes ONCE at construction (not per forward call)."""

    def __init__(self, params, index: int = 0):
        w1, b1, w2, b2 = params
        self.params = params
        self.index = index
        d_in, d_hid = w1.shape
        self.d_out = w2.shape[1]
        d_in_p = _round_up(d_in, _LANE)
        d_hid_p = _round_up(d_hid, _LANE)
        d_out_p = _round_up(self.d_out, _LANE)
        b1 = jnp.reshape(b1, (1, d_hid))
        b2 = jnp.reshape(b2, (1, self.d_out))
        self._padded = (
            _pad2(w1, d_in_p, d_hid_p),
            _pad2(b1, 1, d_hid_p),
            _pad2(w2, d_hid_p, d_out_p),
            _pad2(b2, 1, d_out_p),
        )

    def forward(self, *inputs):
        (x,) = inputs
        w1, b1, w2, b2 = self._padded
        return model_shard_forward(x, w1, b1, w2, b2,
                                   out_features=self.d_out)

    __call__ = forward

    # TODO(synk): implement forward_load as a cross-pallas_call weight-prefetch
    # DMA (semaphore + VMEM-ref outputs) to hide HBM weight streaming.
    def forward_load(self, non_blocking: bool = True) -> None:
        pass

    def backward_load(self, non_blocking: bool = True) -> None:
        pass

    def forward_drop(self, non_blocking: bool = True) -> None:
        pass

    def backward_drop(self, non_blocking: bool = True) -> None:
        pass


# --------------------------------------------------------------------------
# Test scaffolding
# --------------------------------------------------------------------------
def init_shard_params(key, d_in, d_hid, d_out, dtype=jnp.float32):
    """Deterministic init matching torch.nn.Linear shapes (stored (in, out))."""
    k1, k2, k3, k4 = jax.random.split(key, 4)
    lim1 = 1.0 / (d_in ** 0.5)
    lim2 = 1.0 / (d_hid ** 0.5)
    w1 = jax.random.uniform(k1, (d_in, d_hid), dtype, -lim1, lim1)
    b1 = jax.random.uniform(k2, (1, d_hid), dtype, -lim1, lim1)
    w2 = jax.random.uniform(k3, (d_hid, d_out), dtype, -lim2, lim2)
    b2 = jax.random.uniform(k4, (1, d_out), dtype, -lim2, lim2)
    return w1, b1, w2, b2


def _ref_forward(x, params):
    w1, b1, w2, b2 = params
    return jnp.maximum(x @ w1 + b1, 0.0) @ w2 + b2


if __name__ == "__main__":
    key = jax.random.PRNGKey(0)
    k_x, k_x2, k_p = jax.random.split(key, 3)

    batch, d_in, d_hid, d_out = 8, 32, 64, 32
    x = jax.random.normal(k_x, (batch, d_in), jnp.float32)
    params = init_shard_params(k_p, d_in, d_hid, d_out)

    # 1) Module wrapper (resident-weight path, weights pre-padded once).
    shard = ModelShardPallas(params, index=0)
    y = jax.block_until_ready(shard(x))
    y_ref = _ref_forward(x, params)
    assert y.shape == (batch, d_out)
    assert jnp.allclose(y, y_ref, atol=1e-5, rtol=1e-5)

    # 2) Batch-tiled path (grid > 1) with a non-trivial batch.
    x2 = jax.random.normal(k_x2, (24, d_in), jnp.float32)
    w1, b1, w2, b2 = params
    y2 = jax.block_until_ready(
        model_shard_forward(x2, w1, b1, w2, b2, block_batch=8))
    y2_ref = _ref_forward(x2, params)
    assert y2.shape == (24, d_out)
    assert jnp.allclose(y2, y2_ref, atol=1e-5, rtol=1e-5)

    # 3) Streamed-weight (hidden-tiled) fallback path, forced for coverage.
    d_hid_big = 256
    params_big = init_shard_params(k_p, d_in, d_hid_big, d_out)
    w1b, b1b, w2b, b2b = params_big
    y3 = jax.block_until_ready(
        model_shard_forward(x, w1b, b1b, w2b, b2b, hidden_block=128))
    y3_ref = _ref_forward(x, params_big)
    assert y3.shape == (batch, d_out)
    assert jnp.allclose(y3, y3_ref, atol=1e-4, rtol=1e-4)

    # 4) Opt-in bf16-operand MXU fast path (looser tolerance, f32 accumulate).
    y4 = jax.block_until_ready(
        model_shard_forward(x, w1, b1, w2, b2, use_bf16_operands=True))
    assert jnp.allclose(y4, y_ref, atol=5e-2, rtol=5e-2)

    print("KERNEL_OK")
</pallas_src>

<mosaic_0001>
module attributes {stable_mosaic.version = 11 : i64} {
  func.func @_mlp_resident_kernel(%arg0: i32, %arg1: memref<8x128xf32, #tpu.memory_space<vmem>>, %arg2: memref<128x128xf32, #tpu.memory_space<vmem>>, %arg3: memref<1x128xf32, #tpu.memory_space<vmem>>, %arg4: memref<128x128xf32, #tpu.memory_space<vmem>>, %arg5: memref<1x128xf32, #tpu.memory_space<vmem>>, %arg6: memref<8x128xf32, #tpu.memory_space<vmem>>) attributes {dimension_semantics = [#tpu.dimension_semantics<parallel>], iteration_bounds = array<i64: 1>, scalar_prefetch = 0 : i64, scratch_operands = 0 : i64, tpu.core_type = #tpu.core_type<tc>, window_params = [{transform_indices = @transform_0, window_bounds = array<i64: 8, 128>}, {pipeline_mode = #tpu.pipeline_mode<synchronous>, transform_indices = @transform_1, window_bounds = array<i64: 128, 128>}, {pipeline_mode = #tpu.pipeline_mode<synchronous>, transform_indices = @transform_2, window_bounds = array<i64: 1, 128>}, {pipeline_mode = #tpu.pipeline_mode<synchronous>, transform_indices = @transform_3, window_bounds = array<i64: 128, 128>}, {pipeline_mode = #tpu.pipeline_mode<synchronous>, transform_indices = @transform_4, window_bounds = array<i64: 1, 128>}, {transform_indices = @transform_5, window_bounds = array<i64: 8, 128>}]} {
    %c0 = arith.constant 0 : index
    %c0_0 = arith.constant 0 : index
    %0 = vector.load %arg1[%c0, %c0_0] : memref<8x128xf32, #tpu.memory_space<vmem>>, vector<8x128xf32>
    %c0_1 = arith.constant 0 : index
    %c0_2 = arith.constant 0 : index
    %1 = vector.load %arg2[%c0_1, %c0_2] : memref<128x128xf32, #tpu.memory_space<vmem>>, vector<128x128xf32>
    %c0_3 = arith.constant 0 : index
    %c0_4 = arith.constant 0 : index
    %2 = vector.load %arg4[%c0_3, %c0_4] : memref<128x128xf32, #tpu.memory_space<vmem>>, vector<128x128xf32>
    %cst = arith.constant dense<0.000000e+00> : vector<8x128xf32>
    %3 = tpu.matmul %0, %1, %cst {dimension_numbers = #tpu.dot_dimension_numbers<[1], [0], [0], [1], [0, 0, 1, 1], [], []>} : vector<8x128xf32>, vector<128x128xf32>, vector<8x128xf32> -> vector<8x128xf32>
    %c0_5 = arith.constant 0 : index
    %c0_6 = arith.constant 0 : index
    %4 = vector.load %arg3[%c0_5, %c0_6] : memref<1x128xf32, #tpu.memory_space<vmem>>, vector<1x128xf32>
    %5 = vector.broadcast %4 : vector<1x128xf32> to vector<8x128xf32>
    %6 = arith.addf %3, %5 : vector<8x128xf32>
    %cst_7 = arith.constant 0.000000e+00 : f32
    %7 = vector.broadcast %cst_7 : f32 to vector<8x128xf32>
    %8 = arith.maximumf %6, %7 : vector<8x128xf32>
    %cst_8 = arith.constant dense<0.000000e+00> : vector<8x128xf32>
    %9 = tpu.matmul %8, %2, %cst_8 {dimension_numbers = #tpu.dot_dimension_numbers<[1], [0], [0], [1], [0, 0, 1, 1], [], []>} : vector<8x128xf32>, vector<128x128xf32>, vector<8x128xf32> -> vector<8x128xf32>
    %c0_9 = arith.constant 0 : index
    %c0_10 = arith.constant 0 : index
    %10 = vector.load %arg5[%c0_9, %c0_10] : memref<1x128xf32, #tpu.memory_space<vmem>>, vector<1x128xf32>
    %11 = vector.broadcast %10 : vector<1x128xf32> to vector<8x128xf32>
    %12 = arith.addf %9, %11 : vector<8x128xf32>
    %c0_11 = arith.constant 0 : index
    %c0_12 = arith.constant 0 : index
    %13 = vector.load %arg6[%c0_11, %c0_12] : memref<8x128xf32, #tpu.memory_space<vmem>>, vector<8x128xf32>
    tpu.vector_store %arg6[%c0_11, %c0_12], %12 {strides = array<i32>} : memref<8x128xf32, #tpu.memory_space<vmem>>, vector<8x128xf32>,
    return
  }
  func.func @transform_0(%arg0: i32) -> (i32, i32) {
    %c0_i32 = arith.constant 0 : i32
    %c0_i32_0 = arith.constant 0 : i32
    return %arg0, %c0_i32 : i32, i32
  }
  func.func @transform_1(%arg0: i32) -> (i32, i32) {
    %c0_i32 = arith.constant 0 : i32
    %c0_i32_0 = arith.constant 0 : i32
    %c0_i32_1 = arith.constant 0 : i32
    return %c0_i32, %c0_i32_0 : i32, i32
  }
  func.func @transform_2(%arg0: i32) -> (i32, i32) {
    %c0_i32 = arith.constant 0 : i32
    %c0_i32_0 = arith.constant 0 : i32
    %c0_i32_1 = arith.constant 0 : i32
    return %c0_i32, %c0_i32_0 : i32, i32
  }
  func.func @transform_3(%arg0: i32) -> (i32, i32) {
    %c0_i32 = arith.constant 0 : i32
    %c0_i32_0 = arith.constant 0 : i32
    %c0_i32_1 = arith.constant 0 : i32
    return %c0_i32, %c0_i32_0 : i32, i32
  }
  func.func @transform_4(%arg0: i32) -> (i32, i32) {
    %c0_i32 = arith.constant 0 : i32
    %c0_i32_0 = arith.constant 0 : i32
    %c0_i32_1 = arith.constant 0 : i32
    return %c0_i32, %c0_i32_0 : i32, i32
  }
  func.func @transform_5(%arg0: i32) -> (i32, i32) {
    %c0_i32 = arith.constant 0 : i32
    %c0_i32_0 = arith.constant 0 : i32
    return %arg0, %c0_i32 : i32, i32
  }
}

</mosaic_0001>

<bundles_post_ra>
// kernel: tpu_custom_call.1
= control target key start
LH: loop header
LB: loop body
LE: loop exit
PB: predicated region body
PF: predicated region fallthrough
CT: control target
= control target key end

     0   :  { %10 = vsyncpa [#allocation3], 0  ;;  %s331_s0 = inlined_call_operand.hbm [shape: f32[8,128], index: 0, kind: input, shape index: {}]   ;;  %s332_s1 = inlined_call_operand.hbm [shape: f32[128,128], index: 1, kind: input, shape index: {}]   ;;  %s333_s2 = inlined_call_operand.vmem [shape: f32[1,128], index: 2, kind: input, shape index: {}]   ;;  %s334_s3 = inlined_call_operand.hbm [shape: f32[128,128], index: 3, kind: input, shape index: {}]   ;;  %s335_s4 = inlined_call_operand.vmem [shape: f32[1,128], index: 4, kind: input, shape index: {}]   ;;  %s336_s5 = inlined_call_operand.hbm [shape: f32[8,128], index: 5, kind: output, shape index: {}]  }
   0x1   :  { %11 = vsyncpa [#allocation6], 0  ;;  %s28_s20 = sshll.u32 %s332_s1, 4  ;;  %s29_s20 = int_to_ptr.hbm [resolvable:$true] %s28_s20 }
   0x2   :  { %12 = vsyncpa [#allocation4], 0  ;;  %s277_s21 = smov [#allocation5]   ;;  %s18_s25 = sshll.u32 %s331_s0, 4  ;;  %s19_s25 = int_to_ptr.hbm [resolvable:$true] %s18_s25 }
   0x3   :  { %s30_s22 = sshll.u32 %s277_s21, 4  ;;  %s278_s26 = smov 128   ;;  %s31_s22 = int_to_ptr.vmem [resolvable:$true] %s30_s22 }
   0x4   :  { %s279_s27 = smov 8   ;;  %s280_s28 = smov [#allocation2]  }
   0x5   :  { %36 = dma.hbm_to_vmem [thread:$0]  %s29_s20, 2048, %s31_s22, [#allocation6], %s278_s26, %s278_s26, %s279_s27  }
   0x6   :  { %s20_s29 = sshll.u32 %s280_s28, 4  ;;  %s43_s7 = sshll.u32 %s334_s3, 4  ;;  %s21_s29 = int_to_ptr.vmem [resolvable:$true] %s20_s29  ;;  %s44_s7 = int_to_ptr.hbm [resolvable:$true] %s43_s7 }
   0x7   :  { %23 = dma.hbm_to_vmem [thread:$0]  %s19_s25, 128, %s21_s29, [#allocation3]  }
   0x8   :  { %s281_s1 = smov [#allocation7]  }
   0x9   :  { %s45_s8 = sshll.u32 %s281_s1, 4  ;;  %s46_s8 = int_to_ptr.vmem [resolvable:$true] %s45_s8 }
   0xa   :  { %51 = dma.hbm_to_vmem [thread:$0]  %s44_s7, 2048, %s46_s8, [#allocation6], %s278_s26, %s278_s26, %s279_s27  }
   0xb   :  { %271 = dma.done.wait [#allocation3], 128  }
   0xc   :  { %272 = vsyncadd [#allocation3], 4294967168 }
   0xd   :  { %273 = dma.done.wait [#allocation6], 4096  }
   0xe   :  { %274 = vsyncadd [#allocation6], 4294963200  ;;  %v82_v0 = vld [vmem:[#allocation5 + $0x78] sm:$0xff]  ;;  %v81_v1 = vld [vmem:[#allocation5 + $0x70] sm:$0xff]  ;;  %s282_s11 = smov [#allocation8]   ;;  %s156_s15 = sshll.u32 %s336_s5, 4  ;;  %s157_s15 = int_to_ptr.hbm [resolvable:$true] %s156_s15 }
   0xf   :  { %103 = vmatpush.msra.mxu0 %v82_v0  ;;  %v80_v2 = vld [vmem:[#allocation5 + $0x68] sm:$0xff]  ;;  %v79_v3 = vld [vmem:[#allocation5 + $0x60] sm:$0xff]  ;;  %v98_v4 = vld [vmem:[#allocation7 + $0x78] sm:$0xff]  ;;  %s154_s12 = sshll.u32 %s282_s11, 4  ;;  %s155_s12 = int_to_ptr.vmem [resolvable:$true] %s154_s12 }
  0x10   :  { %v78_v5 = vld [vmem:[#allocation5 + $0x58] sm:$0xff]  ;;  %128 = vmatpush.msra.mxu1 %v98_v4  ;;  %v97_v6 = vld [vmem:[#allocation7 + $0x70] sm:$0xff]  ;;  %v96_v7 = vld [vmem:[#allocation7 + $0x68] sm:$0xff] }
  0x11   :  { %104 = vmatpush.msra.mxu0 %v81_v1  ;;  %v77_v8 = vld [vmem:[#allocation5 + $0x50] sm:$0xff]  ;;  %v95_v9 = vld [vmem:[#allocation7 + $0x60] sm:$0xff]  ;;  %v76_v10 = vld [vmem:[#allocation5 + $0x48] sm:$0xff] }
  0x12   :  { %129 = vmatpush.msra.mxu1 %v97_v6  ;;  %v94_v11 = vld [vmem:[#allocation7 + $0x58] sm:$0xff]  ;;  %v75_v12 = vld [vmem:[#allocation5 + $0x40] sm:$0xff]  ;;  %v93_v13 = vld [vmem:[#allocation7 + $0x50] sm:$0xff] }
  0x13   :  { %105 = vmatpush.msra.mxu0 %v80_v2  ;;  %v74_v14 = vld [vmem:[#allocation5 + $0x38] sm:$0xff]  ;;  %v92_v15 = vld [vmem:[#allocation7 + $0x48] sm:$0xff]  ;;  %v73_v16 = vld [vmem:[#allocation5 + $0x30] sm:$0xff] }
  0x14   :  { %130 = vmatpush.msra.mxu1 %v96_v7  ;;  %v91_v17 = vld [vmem:[#allocation7 + $0x40] sm:$0xff]  ;;  %v72_v18 = vld [vmem:[#allocation5 + $0x28] sm:$0xff]  ;;  %v90_v19 = vld [vmem:[#allocation7 + $0x38] sm:$0xff] }
  0x15   :  { %106 = vmatpush.msra.mxu0 %v79_v3  ;;  %v71_v20 = vld [vmem:[#allocation5 + $0x20] sm:$0xff]  ;;  %v89_v21 = vld [vmem:[#allocation7 + $0x30] sm:$0xff]  ;;  %v70_v22 = vld [vmem:[#allocation5 + $0x18] sm:$0xff] }
  0x16   :  { %131 = vmatpush.msra.mxu1 %v95_v9  ;;  %v88_v23 = vld [vmem:[#allocation7 + $0x28] sm:$0xff]  ;;  %v69_v24 = vld [vmem:[#allocation5 + $0x10] sm:$0xff]  ;;  %v87_v25 = vld [vmem:[#allocation7 + $0x20] sm:$0xff] }
  0x17   :  { %107 = vmatpush.msra.mxu0 %v78_v5  ;;  %v68_v26 = vld [vmem:[#allocation5 + $0x8] sm:$0xff]  ;;  %v86_v27 = vld [vmem:[#allocation7 + $0x18] sm:$0xff]  ;;  %v67_v28 = vld [vmem:[#allocation5] sm:$0xff] }
  0x18   :  { %132 = vmatpush.msra.mxu1 %v94_v11  ;;  %v66_v29 = vld [vmem:[#allocation2] sm:$0xff]  ;;  %v85_v30 = vld [vmem:[#allocation7 + $0x10] sm:$0xff]  ;;  %v84_v31 = vld [vmem:[#allocation7 + $0x8] sm:$0xff] }
  0x19   :  { %108 = vmatpush.msra.mxu0 %v77_v8  ;;  %v83_v32 = vld [vmem:[#allocation7] sm:$0xff]  ;;  %v173_v33 = vld [vmem:[%s333_s2] ss:$0 sm:$0xff] }
  0x1a   :  { %133 = vmatpush.msra.mxu1 %v93_v13  ;;  %v174_v37 = vld [vmem:[%s335_s4] ss:$0 sm:$0xff] }
  0x1b   :  { %109 = vmatpush.msra.mxu0 %v76_v10 }
  0x1c   :  { %134 = vmatpush.msra.mxu1 %v92_v15 }
  0x1d   :  { %110 = vmatpush.msra.mxu0 %v75_v12 }
  0x1e   :  { %135 = vmatpush.msra.mxu1 %v91_v17 }
  0x1f   :  { %111 = vmatpush.msra.mxu0 %v74_v14 }
  0x20   :  { %136 = vmatpush.msra.mxu1 %v90_v19 }
  0x21   :  { %112 = vmatpush.msra.mxu0 %v73_v16 }
  0x22   :  { %137 = vmatpush.msra.mxu1 %v89_v21 }
  0x23   :  { %113 = vmatpush.msra.mxu0 %v72_v18 }
  0x24   :  { %138 = vmatpush.msra.mxu1 %v88_v23 }
  0x25   :  { %114 = vmatpush.msra.mxu0 %v71_v20 }
  0x26   :  { %139 = vmatpush.msra.mxu1 %v87_v25 }
  0x27   :  { %115 = vmatpush.msra.mxu0 %v70_v22 }
  0x28   :  { %140 = vmatpush.msra.mxu1 %v86_v27 }
  0x29   :  { %116 = vmatpush.msra.mxu0 %v69_v24 }
  0x2a   :  { %141 = vmatpush.msra.mxu1 %v85_v30 }
  0x2b   :  { %117 = vmatpush.msra.mxu0 %v68_v26 }
  0x2c   :  { %142 = vmatpush.msra.mxu1 %v84_v31 }
  0x2d   :  { %118 = vmatpush.msra.mxu0 %v67_v28 }
  0x2e   :  { %119 = vmatmul.f32.vlgmr.msra.gmra.mxu0 %v66_v29  ;;  %143 = vmatpush.msra.mxu1 %v83_v32 }
  0xab   :  { %v120_v34 = vpop.f32.mrf.mxu0 }
  0xac   :  { %v121_v35 = vadd.f32 %v173_v33, %v120_v34 }
  0xae   :  { %v123_v36 = vmax.f32 %v121_v35, 0.0 }
  0xb0   :  { %144 = vmatmul.f32.vlgmr.msra.gmra.mxu1 %v123_v36 }
 0x12d   :  { %v145_v38 = vpop.f32.mrf.mxu1 }
 0x12e   :  { %v146_v39 = vadd.f32 %v174_v37, %v145_v38 }
 0x130   :  { %148 = vst [vmem:[#allocation8] sm:$0xff] %v146_v39 }
 0x131   :  { %159 = dma.vmem_to_hbm [thread:$0]  %s155_s12, 128, %s157_s15, [#allocation4]  }
 0x132   :  { %275 = dma.done.wait [#allocation4], 128  }
 0x133   :  { %276 = vsyncadd [#allocation4], 4294967168 }
 0x134   :  { %164 = vsyncpa [#allocation3], 1 }
 0x135   :  { %165 = vsyncpa [#allocation6], 1 }
 0x136   :  { %166 = vsyncpa [#allocation4], 1 }

</bundles_post_ra>
